<compile_context>
chip_gen: v7x
topology: tpu7x:2x2x1
jax: 0.10.0
libtpu: 0.0.40
codegen_flags: <defaults>
</compile_context>

<pallas_src>
import functools
import math

import jax
import jax.numpy as jnp
from jax import lax
from jax.experimental import pallas as pl
from jax.experimental.pallas import tpu as pltpu


_MASK_VALUE = -1e30  # finite "minus infinity" for padded KV columns


def _round_up(x, m):
    return (x + m - 1) // m * m


# --------------------------------------------------------------------------
# Kernel 1: fused Q/K/V projection (one NN matmul per weight per token tile).
# --------------------------------------------------------------------------
def _qkv_proj_kernel(x_ref, wq_ref, wk_ref, wv_ref, q_ref, k_ref, v_ref):
    x = x_ref[...]
    q_ref[...] = jnp.dot(x, wq_ref[...],
                         preferred_element_type=jnp.float32).astype(q_ref.dtype)
    k_ref[...] = jnp.dot(x, wk_ref[...],
                         preferred_element_type=jnp.float32).astype(k_ref.dtype)
    v_ref[...] = jnp.dot(x, wv_ref[...],
                         preferred_element_type=jnp.float32).astype(v_ref.dtype)


# --------------------------------------------------------------------------
# Kernel 2: flash attention over pre-projected (and pre-transposed-K) q/kT/v.
# --------------------------------------------------------------------------
def _flash_kernel(q_ref, kt_ref, v_ref, o_ref, m_s, l_s, acc_s,
                  *, t_actual, t_padded, block_k):
    kv = pl.program_id(2)

    @pl.when(kv == 0)
    def _init():
        m_s[...] = jnp.full_like(m_s, -jnp.inf)
        l_s[...] = jnp.zeros_like(l_s)
        acc_s[...] = jnp.zeros_like(acc_s)

    # Plain NN matmul on the MXU: (tq, d) x (d, tk) -> (tq, tk), f32 accumulate.
    s = jnp.dot(q_ref[...], kt_ref[...], preferred_element_type=jnp.float32)

    if t_actual != t_padded:
        # Mask padded KV positions (only emitted when T was padded up).
        col = kv * block_k + lax.broadcasted_iota(jnp.int32, s.shape, 1)
        s = jnp.where(col < t_actual, s, _MASK_VALUE)

    # Online softmax update — the full (T, T) score matrix never materializes.
    # exp / running stats stay f32 (v5e has no bf16 VPU/EUP; cheap insurance on
    # v6e/v7x too).
    m_prev = m_s[...]
    m_new = jnp.maximum(m_prev, jnp.max(s, axis=-1, keepdims=True))
    alpha = jnp.exp(m_prev - m_new)
    p = jnp.exp(s - m_new)
    l_s[...] = alpha * l_s[...] + jnp.sum(p, axis=-1, keepdims=True)
    acc_s[...] = alpha * acc_s[...] + jnp.dot(
        p.astype(v_ref.dtype), v_ref[...], preferred_element_type=jnp.float32)
    m_s[...] = m_new

    @pl.when(kv == pl.num_programs(2) - 1)
    def _finalize():
        inv_l = pl.reciprocal(l_s[...], approx=True)   # EUP slot, not VALU divide
        o_ref[...] = (acc_s[...] * inv_l).astype(o_ref.dtype)


# --------------------------------------------------------------------------
# Wrapper
# --------------------------------------------------------------------------
def causal_attention(x, w_query, w_key, w_value, *,
                     block_q=256, block_k=256,
                     compute_dtype=jnp.bfloat16):
    """x: (B, T, d_in); w_*: PyTorch-layout (d_out, d_in). Returns (B, T, d_out)."""
    B, T, d_in = x.shape
    d_out = w_query.shape[0]
    scale = 1.0 / math.sqrt(d_out)   # reference divides by sqrt(keys.shape[-1]) = sqrt(d_out)

    # Lane-dense feature dims; token dim rounds to a single tile size (no lcm).
    d_in_p = _round_up(d_in, 128)
    d_out_p = _round_up(d_out, 128)
    t8 = _round_up(T, 8)
    tq = min(block_q, t8)
    tk = min(block_k, t8)
    T_p = _round_up(T, max(tq, tk))
    if T_p % tq or T_p % tk:          # awkward user block sizes -> one tile size
        tq = tk = max(tq, tk)
        T_p = _round_up(T, tq)
    nq, nk = T_p // tq, T_p // tk
    tt = tq                            # token tile for the projection kernel

    cdt = jnp.dtype(compute_dtype)
    odt = jnp.dtype(x.dtype)

    # ---- one-time wrapper-side layout plumbing (O(T*d) / O(d^2), cheap) ----
    x_p = jnp.pad(x, ((0, 0), (0, T_p - T), (0, d_in_p - d_in))).astype(compute_dtype)

    def prep_w(w, s=1.0):
        # pad -> pre-transpose to (d_in_p, d_out_p) -> cast to MXU operand dtype
        w = jnp.pad(w, ((0, d_out_p - d_out), (0, d_in_p - d_in)))
        return (w.T * s).astype(compute_dtype)

    wq_t = prep_w(w_query, scale)      # fold 1/sqrt(d_out) into W_query
    wk_t = prep_w(w_key)
    wv_t = prep_w(w_value)

    def vmem_limit(nbytes):
        # footprint-derived limit with headroom, capped below v7x's 64 MiB VMEM
        return int(min(48 * 2**20, max(16 * 2**20, 2 * nbytes)))

    # ---------------- projection pallas_call ----------------
    proj_block_bytes = (2 * tt * d_in_p * cdt.itemsize              # x tile (dbl-buf)
                        + 2 * 3 * d_in_p * d_out_p * cdt.itemsize   # 3 weight blocks (dbl-buf)
                        + 2 * 3 * tt * d_out_p * cdt.itemsize)      # q/k/v tiles (dbl-buf)
    proj_cost = pl.CostEstimate(
        flops=int(2 * B * T_p * d_in_p * 3 * d_out_p),
        transcendentals=0,
        bytes_accessed=int(B * T_p * d_in_p * cdt.itemsize
                           + 3 * d_in_p * d_out_p * cdt.itemsize
                           + 3 * B * T_p * d_out_p * cdt.itemsize))
    qkv_shape = jax.ShapeDtypeStruct((B, T_p, d_out_p), compute_dtype)
    q, k, v = pl.pallas_call(
        _qkv_proj_kernel,
        out_shape=(qkv_shape, qkv_shape, qkv_shape),
        grid_spec=pltpu.PrefetchScalarGridSpec(
            num_scalar_prefetch=0,
            grid=(B, T_p // tt),
            in_specs=[
                pl.BlockSpec((None, tt, d_in_p), lambda b, t: (b, t, 0)),
                pl.BlockSpec((d_in_p, d_out_p), lambda b, t: (0, 0)),
                pl.BlockSpec((d_in_p, d_out_p), lambda b, t: (0, 0)),
                pl.BlockSpec((d_in_p, d_out_p), lambda b, t: (0, 0)),
            ],
            out_specs=(
                pl.BlockSpec((None, tt, d_out_p), lambda b, t: (b, t, 0)),
                pl.BlockSpec((None, tt, d_out_p), lambda b, t: (b, t, 0)),
                pl.BlockSpec((None, tt, d_out_p), lambda b, t: (b, t, 0)),
            ),
        ),
        compiler_params=pltpu.CompilerParams(
            dimension_semantics=("parallel", "parallel"),
            vmem_limit_bytes=vmem_limit(proj_block_bytes),
        ),
        cost_estimate=proj_cost,
    )(x_p, wq_t, wk_t, wv_t)

    # One-time K transpose so the score matmul in the flash kernel is a plain
    # NN (tq,d)x(d,tk) matmul — no per-kv-step NT contraction / XLU transpose.
    kt = jnp.swapaxes(k, 1, 2)   # (B, d_out_p, T_p), lane-dense along tokens

    # ---------------- flash attention pallas_call ----------------
    flash_block_bytes = (2 * (tq * d_out_p + d_out_p * tk + tk * d_out_p) * cdt.itemsize
                         + 2 * tq * d_out_p * odt.itemsize
                         + (tq * d_out_p + 2 * tq * 128) * 4)        # f32 scratch
    flash_cost = pl.CostEstimate(
        flops=int(2 * 2 * B * T_p * T_p * d_out_p),
        transcendentals=int(B * T_p * T_p),
        bytes_accessed=int((1 + 2 * nq) * B * T_p * d_out_p * cdt.itemsize
                           + B * T_p * d_out_p * odt.itemsize))
    kernel = functools.partial(_flash_kernel, t_actual=T, t_padded=T_p, block_k=tk)
    out = pl.pallas_call(
        kernel,
        out_shape=jax.ShapeDtypeStruct((B, T_p, d_out_p), x.dtype),
        grid_spec=pltpu.PrefetchScalarGridSpec(
            num_scalar_prefetch=0,
            grid=(B, nq, nk),
            in_specs=[
                pl.BlockSpec((None, tq, d_out_p), lambda b, qi, kv: (b, qi, 0)),
                pl.BlockSpec((None, d_out_p, tk), lambda b, qi, kv: (b, 0, kv)),
                pl.BlockSpec((None, tk, d_out_p), lambda b, qi, kv: (b, kv, 0)),
            ],
            out_specs=pl.BlockSpec((None, tq, d_out_p),
                                   lambda b, qi, kv: (b, qi, 0)),
            scratch_shapes=[
                pltpu.VMEM((tq, 1), jnp.float32),          # running max
                pltpu.VMEM((tq, 1), jnp.float32),          # running sum
                pltpu.VMEM((tq, d_out_p), jnp.float32),    # output accumulator
            ],
        ),
        compiler_params=pltpu.CompilerParams(
            dimension_semantics=("parallel", "parallel", "arbitrary"),
            vmem_limit_bytes=vmem_limit(flash_block_bytes),
        ),
        cost_estimate=flash_cost,
    )(q, kt, v)

    return out[:, :T, :d_out]


# --------------------------------------------------------------------------
# Pure-JAX reference mirroring the (effective) PyTorch forward.
# --------------------------------------------------------------------------
def _reference(x, w_query, w_key, w_value):
    q = jnp.einsum("btd,od->bto", x, w_query)
    k = jnp.einsum("btd,od->bto", x, w_key)
    v = jnp.einsum("btd,od->bto", x, w_value)
    scores = jnp.einsum("bqd,bkd->bqk", q, k) / jnp.sqrt(jnp.float32(k.shape[-1]))
    w = jax.nn.softmax(scores, axis=-1)
    return jnp.einsum("bqk,bkd->bqd", w, v)


def _make_inputs(key, B, T, d_in, d_out):
    kx, kq, kk, kv = jax.random.split(key, 4)
    x = jax.random.normal(kx, (B, T, d_in), dtype=jnp.float32)
    bound = 1.0 / math.sqrt(d_in)   # PyTorch Linear default init range
    wq = jax.random.uniform(kq, (d_out, d_in), jnp.float32, -bound, bound)
    wk = jax.random.uniform(kk, (d_out, d_in), jnp.float32, -bound, bound)
    wv = jax.random.uniform(kv, (d_out, d_in), jnp.float32, -bound, bound)
    return x, wq, wk, wv


if __name__ == "__main__":
    key = jax.random.PRNGKey(0)
    k1, k2 = jax.random.split(key)

    # Case 1: shapes consistent with the module (b=2, num_tokens=8, d_in=d_out=32).
    B, T, D_IN, D_OUT = 2, 8, 32, 32
    x, wq, wk, wv = _make_inputs(k1, B, T, D_IN, D_OUT)
    ref = _reference(x, wq, wk, wv)

    out_bf16 = jax.block_until_ready(causal_attention(x, wq, wk, wv))
    assert out_bf16.shape == (B, T, D_OUT)
    assert jnp.allclose(out_bf16, ref, atol=2e-2, rtol=2e-2)   # bf16 MXU operands

    out_f32 = jax.block_until_ready(
        causal_attention(x, wq, wk, wv, compute_dtype=jnp.float32))
    assert jnp.allclose(out_f32, ref, atol=5e-3, rtol=5e-3)    # tight f32 check

    # Case 2: non-aligned shapes exercising token/feature padding + KV masking.
    B2, T2, DI2, DO2 = 2, 12, 24, 20
    x2, wq2, wk2, wv2 = _make_inputs(k2, B2, T2, DI2, DO2)
    ref2 = _reference(x2, wq2, wk2, wv2)

    out2 = jax.block_until_ready(causal_attention(x2, wq2, wk2, wv2))
    assert out2.shape == (B2, T2, DO2)
    assert jnp.allclose(out2, ref2, atol=2e-2, rtol=2e-2)

    out2_f32 = jax.block_until_ready(
        causal_attention(x2, wq2, wk2, wv2, compute_dtype=jnp.float32))
    assert jnp.allclose(out2_f32, ref2, atol=5e-3, rtol=5e-3)

    print("KERNEL_OK")
</pallas_src>

<mosaic_0001>
module attributes {stable_mosaic.version = 11 : i64} {
  func.func @_qkv_proj_kernel(%arg0: i32, %arg1: i32, %arg2: memref<1x8x128xbf16, #tpu.memory_space<vmem>>, %arg3: memref<128x128xbf16, #tpu.memory_space<vmem>>, %arg4: memref<128x128xbf16, #tpu.memory_space<vmem>>, %arg5: memref<128x128xbf16, #tpu.memory_space<vmem>>, %arg6: memref<1x8x128xbf16, #tpu.memory_space<vmem>>, %arg7: memref<1x8x128xbf16, #tpu.memory_space<vmem>>, %arg8: memref<1x8x128xbf16, #tpu.memory_space<vmem>>) attributes {dimension_semantics = [#tpu.dimension_semantics<parallel>, #tpu.dimension_semantics<parallel>], iteration_bounds = array<i64: 2, 1>, scalar_prefetch = 0 : i64, scratch_operands = 0 : i64, tpu.core_type = #tpu.core_type<tc>, window_params = [{transform_indices = @transform_0, window_bounds = array<i64: 1, 8, 128>}, {pipeline_mode = #tpu.pipeline_mode<synchronous>, transform_indices = @transform_1, window_bounds = array<i64: 128, 128>}, {pipeline_mode = #tpu.pipeline_mode<synchronous>, transform_indices = @transform_2, window_bounds = array<i64: 128, 128>}, {pipeline_mode = #tpu.pipeline_mode<synchronous>, transform_indices = @transform_3, window_bounds = array<i64: 128, 128>}, {transform_indices = @transform_4, window_bounds = array<i64: 1, 8, 128>}, {transform_indices = @transform_5, window_bounds = array<i64: 1, 8, 128>}, {transform_indices = @transform_6, window_bounds = array<i64: 1, 8, 128>}]} {
    %c0 = arith.constant 0 : index
    %c0_0 = arith.constant 0 : index
    %c0_1 = arith.constant 0 : index
    %0 = vector.load %arg2[%c0, %c0_0, %c0_1] : memref<1x8x128xbf16, #tpu.memory_space<vmem>>, vector<1x8x128xbf16>
    %1 = vector.shape_cast %0 : vector<1x8x128xbf16> to vector<8x128xbf16>
    %c0_2 = arith.constant 0 : index
    %c0_3 = arith.constant 0 : index
    %2 = vector.load %arg3[%c0_2, %c0_3] : memref<128x128xbf16, #tpu.memory_space<vmem>>, vector<128x128xbf16>
    %cst = arith.constant dense<0.000000e+00> : vector<8x128xf32>
    %3 = tpu.matmul %1, %2, %cst {dimension_numbers = #tpu.dot_dimension_numbers<[1], [0], [0], [1], [0, 0, 1, 1], [], []>} : vector<8x128xbf16>, vector<128x128xbf16>, vector<8x128xf32> -> vector<8x128xf32>
    %4 = arith.truncf %3 : vector<8x128xf32> to vector<8x128xbf16>
    %c0_4 = arith.constant 0 : index
    %c0_5 = arith.constant 0 : index
    %c0_6 = arith.constant 0 : index
    %5 = vector.load %arg6[%c0_4, %c0_5, %c0_6] : memref<1x8x128xbf16, #tpu.memory_space<vmem>>, vector<1x8x128xbf16>
    %6 = vector.shape_cast %5 : vector<1x8x128xbf16> to vector<8x128xbf16>
    %7 = vector.shape_cast %4 : vector<8x128xbf16> to vector<1x8x128xbf16>
    tpu.vector_store %arg6[%c0_4, %c0_5, %c0_6], %7 {strides = array<i32>} : memref<1x8x128xbf16, #tpu.memory_space<vmem>>, vector<1x8x128xbf16>,
    %c0_7 = arith.constant 0 : index
    %c0_8 = arith.constant 0 : index
    %8 = vector.load %arg4[%c0_7, %c0_8] : memref<128x128xbf16, #tpu.memory_space<vmem>>, vector<128x128xbf16>
    %cst_9 = arith.constant dense<0.000000e+00> : vector<8x128xf32>
    %9 = tpu.matmul %1, %8, %cst_9 {dimension_numbers = #tpu.dot_dimension_numbers<[1], [0], [0], [1], [0, 0, 1, 1], [], []>} : vector<8x128xbf16>, vector<128x128xbf16>, vector<8x128xf32> -> vector<8x128xf32>
    %10 = arith.truncf %9 : vector<8x128xf32> to vector<8x128xbf16>
    %c0_10 = arith.constant 0 : index
    %c0_11 = arith.constant 0 : index
    %c0_12 = arith.constant 0 : index
    %11 = vector.load %arg7[%c0_10, %c0_11, %c0_12] : memref<1x8x128xbf16, #tpu.memory_space<vmem>>, vector<1x8x128xbf16>
    %12 = vector.shape_cast %11 : vector<1x8x128xbf16> to vector<8x128xbf16>
    %13 = vector.shape_cast %10 : vector<8x128xbf16> to vector<1x8x128xbf16>
    tpu.vector_store %arg7[%c0_10, %c0_11, %c0_12], %13 {strides = array<i32>} : memref<1x8x128xbf16, #tpu.memory_space<vmem>>, vector<1x8x128xbf16>,
    %c0_13 = arith.constant 0 : index
    %c0_14 = arith.constant 0 : index
    %14 = vector.load %arg5[%c0_13, %c0_14] : memref<128x128xbf16, #tpu.memory_space<vmem>>, vector<128x128xbf16>
    %cst_15 = arith.constant dense<0.000000e+00> : vector<8x128xf32>
    %15 = tpu.matmul %1, %14, %cst_15 {dimension_numbers = #tpu.dot_dimension_numbers<[1], [0], [0], [1], [0, 0, 1, 1], [], []>} : vector<8x128xbf16>, vector<128x128xbf16>, vector<8x128xf32> -> vector<8x128xf32>
    %16 = arith.truncf %15 : vector<8x128xf32> to vector<8x128xbf16>
    %c0_16 = arith.constant 0 : index
    %c0_17 = arith.constant 0 : index
    %c0_18 = arith.constant 0 : index
    %17 = vector.load %arg8[%c0_16, %c0_17, %c0_18] : memref<1x8x128xbf16, #tpu.memory_space<vmem>>, vector<1x8x128xbf16>
    %18 = vector.shape_cast %17 : vector<1x8x128xbf16> to vector<8x128xbf16>
    %19 = vector.shape_cast %16 : vector<8x128xbf16> to vector<1x8x128xbf16>
    tpu.vector_store %arg8[%c0_16, %c0_17, %c0_18], %19 {strides = array<i32>} : memref<1x8x128xbf16, #tpu.memory_space<vmem>>, vector<1x8x128xbf16>,
    return
  }
  func.func @transform_0(%arg0: i32, %arg1: i32) -> (i32, i32, i32) {
    %c0_i32 = arith.constant 0 : i32
    %c0_i32_0 = arith.constant 0 : i32
    return %arg0, %arg1, %c0_i32 : i32, i32, i32
  }
  func.func @transform_1(%arg0: i32, %arg1: i32) -> (i32, i32) {
    %c0_i32 = arith.constant 0 : i32
    %c0_i32_0 = arith.constant 0 : i32
    %c0_i32_1 = arith.constant 0 : i32
    return %c0_i32, %c0_i32_0 : i32, i32
  }
  func.func @transform_2(%arg0: i32, %arg1: i32) -> (i32, i32) {
    %c0_i32 = arith.constant 0 : i32
    %c0_i32_0 = arith.constant 0 : i32
    %c0_i32_1 = arith.constant 0 : i32
    return %c0_i32, %c0_i32_0 : i32, i32
  }
  func.func @transform_3(%arg0: i32, %arg1: i32) -> (i32, i32) {
    %c0_i32 = arith.constant 0 : i32
    %c0_i32_0 = arith.constant 0 : i32
    %c0_i32_1 = arith.constant 0 : i32
    return %c0_i32, %c0_i32_0 : i32, i32
  }
  func.func @transform_4(%arg0: i32, %arg1: i32) -> (i32, i32, i32) {
    %c0_i32 = arith.constant 0 : i32
    %c0_i32_0 = arith.constant 0 : i32
    return %arg0, %arg1, %c0_i32 : i32, i32, i32
  }
  func.func @transform_5(%arg0: i32, %arg1: i32) -> (i32, i32, i32) {
    %c0_i32 = arith.constant 0 : i32
    %c0_i32_0 = arith.constant 0 : i32
    return %arg0, %arg1, %c0_i32 : i32, i32, i32
  }
  func.func @transform_6(%arg0: i32, %arg1: i32) -> (i32, i32, i32) {
    %c0_i32 = arith.constant 0 : i32
    %c0_i32_0 = arith.constant 0 : i32
    return %arg0, %arg1, %c0_i32 : i32, i32, i32
  }
}

</mosaic_0001>

<bundles_post_ra>
// kernel: tpu_custom_call.1
= control target key start
LH: loop header
LB: loop body
LE: loop exit
PB: predicated region body
PF: predicated region fallthrough
CT: control target
= control target key end

     0   :  { %12 = vsyncpa [#allocation3], 0  ;;  %s1862_s0 = inlined_call_operand.hbm [shape: bf16[2,8,128], index: 0, kind: input, shape index: {}]   ;;  %s1863_s1 = inlined_call_operand.hbm [shape: bf16[128,128], index: 1, kind: input, shape index: {}]   ;;  %s1864_s2 = inlined_call_operand.hbm [shape: bf16[128,128], index: 2, kind: input, shape index: {}]   ;;  %s1865_s3 = inlined_call_operand.hbm [shape: bf16[128,128], index: 3, kind: input, shape index: {}]   ;;  %s1866_s4 = inlined_call_operand.hbm [shape: bf16[2,8,128], index: 4, kind: output, shape index: {0}]   ;;  %s1867_s5 = inlined_call_operand.hbm [shape: bf16[2,8,128], index: 5, kind: output, shape index: {1}]   ;;  %s1868_s6 = inlined_call_operand.hbm [shape: bf16[2,8,128], index: 6, kind: output, shape index: {2}]  }
   0x1   :  { %14 = vsyncpa [#allocation3 + $0x1], 0 }
   0x2   :  { %15 = vsyncpa [#allocation6], 0 }
   0x3   :  { %16 = vsyncpa [#allocation9], 0 }
   0x4   :  { %17 = vsyncpa [#allocation4], 0 }
   0x5   :  { %19 = vsyncpa [#allocation4 + $0x1], 0 }
   0x6   :  { %20 = vsyncpa [#allocation12], 0 }
   0x7   :  { %22 = vsyncpa [#allocation12 + $0x1], 0  ;;  %s1474_s21 = smov 0   ;;  %s1476_s22 = smov 0  }
   0x8   :  { %s1478_s23 = smov 0   ;;  %s1480_s24 = smov 0  }
   0x9   :  { %s1482_s25 = smov 0   ;;  %s1484_s26 = smov 0  }
   0xa LB: > { %1875 = sst [smem:[#allocation19_spill]] %s1406_s21  ;;  %s1505_s27 = sadd.s32 4294967295, %s1426_s26   ;;  %s1426_s26 = sphi %s1484_s26, %s28_s26   ;;  %s1422_s25 = sphi %s1482_s25, %s1900_s25   ;;  %s1418_s24 = sphi %s1480_s24, %s1899_s24   ;;  %s1414_s23 = sphi %s1478_s23, %s1898_s23   ;;  %s1410_s22 = sphi %s1476_s22, %s1897_s22   ;;  %s1406_s21 = sphi %s1474_s21, %s1896_s21  }
   0xb   : > { %s1870_s28 = sadd.s32 4294967294, %s1426_s26   ;;  %p62_p0 = scmp.ne.s32.totalorder %s1410_s22, %s1406_s21 }
   0xc   : > { %p1869_p1 = scmp.eq.s32.totalorder %s1505_s27, 0  ;;  %p157_p3 = scmp.eq.s32.totalorder %s1870_s28, 1 }
   0xd   : > { %p897_p5 = scmp.ge.s32.totalorder %s1426_s26, 1  ;;  %p220_p7 = scmp.lt.s32.totalorder %s1426_s26, 3 }
   0xe   : > { %p1516_p4 = por %p1869_p1, %p62_p0  ;;  %p1521_p6 = por %p157_p3, %p62_p0 }
   0xf   : > { %p1526_p8 = pnand %p897_p5, %p220_p7  ;;  %s1428_s8 = smov [#allocation5]  }
  0x10   : > { %s1876_s29 = scalar_select %p1516_p4, 1, 0 }
  0x11   : > { %s1877_s30 = scalar_select %p1521_p6, 1, 0 }
  0x12   : > { %s1879_s7 = scalar_select %p1526_p8, 1, 0 }
  0x13   : > { %1878 = sst [smem:[#allocation20_spill]] %s1877_s30  ;;  %s232_s9 = sshll.u32 %s1428_s8, 4  ;;  %s1530_s9 = int_to_ptr.vmem [resolvable:$true] %s232_s9 }
  0x14   : > { %p1051_p9 = pneg %p1526_p8  ;;  %s1429_s11 = smov [#allocation7]  }
  0x15   : > { %s245_s12 = sshll.u32 %s1429_s11, 4  ;;  %s1430_s13 = smov [#allocation8]   ;;  %s1541_s12 = int_to_ptr.vmem [resolvable:$true] %s245_s12 }
  0x16   : > { %p1537_p11 = pnand %p1051_p9, %p1869_p1  ;;  %s1543_s14 = sshll.u32 %s1430_s13, 4  ;;  %s259_s14 = int_to_ptr.vmem [resolvable:$true] %s1543_s14 }
  0x17   : > { %s1162_s17 = scalar_lea.hbm %s1863_s1, 1024 }
  0x18   : > { %p1163_p12 = scmp.ne.s32.totalorder %s1863_s1, %s1162_s17  ;;  %p1553_p13 = pneg %p1537_p11 }
  0x19   : > { %p1169_p5 = scmp.lt.u32.totalorder %s1162_s17, %s1863_s1 }
  0x1a   : > { %p1165_p0 = pnand %p1553_p13, %p1163_p12 }
  0x1c   : > { %p1166_p3 = pneg %p1165_p0 }
  0x1e   : > { %p1171_p7 = pnand %p1169_p5, %p1166_p3 }
  0x20   : > { %1174 = shalt.err (!%p1171_p7)
}
  0x21   : > { %s1175_s13 = scalar_lea.vmem %s1530_s9, 1024  ;;  %p1183_p2 = scmp.lt.s32.totalorder %s1530_s9, %s1530_s9 }
  0x22   : > { %p1176_p9 = scmp.ne.s32.totalorder %s1530_s9, %s1175_s13  ;;  %p1184_p6 = scmp.lt.s32.totalorder %s1175_s13, %s1175_s13 }
  0x24   : > { %p1178_p10 = pnand %p1176_p9, %p1553_p13  ;;  %p1185_p12 = por %p1184_p6, %p1183_p2 }
  0x26   : > { %p1179_p1 = pneg %p1178_p10 }
  0x28   : > { %p1186_p0 = pnand %p1185_p12, %p1179_p1 }
  0x2a   : > { %1189 = shalt.err (!%p1186_p0)
}
  0x2b   : > { %s1431_s15 = smov 64   ;;  %s1432_s16 = smov 4  }
  0x2c   : > { %1054 = dma.hbm_to_vmem [thread:$0]  (!%p1537_p11), %s1863_s1, 1024, %s1530_s9, [#allocation6], %s1431_s15, %s1431_s15, %s1432_s16  }
  0x2d   : > { %s1190_s11 = scalar_lea.hbm %s1864_s2, 1024 }
  0x2e   : > { %p1191_p1 = scmp.ne.s32.totalorder %s1864_s2, %s1190_s11  ;;  %p1197_p10 = scmp.lt.u32.totalorder %s1190_s11, %s1864_s2 }
  0x30   : > { %p1193_p2 = pnand %p1191_p1, %p1553_p13 }
  0x32   : > { %p1194_p6 = pneg %p1193_p2 }
  0x34   : > { %p1199_p3 = pnand %p1197_p10, %p1194_p6 }
  0x36   : > { %1202 = shalt.err (!%p1199_p3)
}
  0x37   : > { %s1203_s9 = scalar_lea.vmem %s1541_s12, 1024  ;;  %p1211_p12 = scmp.lt.s32.totalorder %s1541_s12, %s1541_s12 }
  0x38   : > { %p1204_p5 = scmp.ne.s32.totalorder %s1541_s12, %s1203_s9  ;;  %p1212_p0 = scmp.lt.s32.totalorder %s1203_s9, %s1203_s9 }
  0x3a   : > { %p1206_p7 = pnand %p1204_p5, %p1553_p13  ;;  %p1213_p1 = por %p1212_p0, %p1211_p12 }
  0x3c   : > { %p1207_p9 = pneg %p1206_p7 }
  0x3e   : > { %p1214_p2 = pnand %p1213_p1, %p1207_p9 }
  0x40   : > { %1217 = shalt.err (!%p1214_p2)
}
  0x41   : > { %1057 = dma.hbm_to_vmem [thread:$0]  (!%p1537_p11), %s1864_s2, 1024, %s1541_s12, [#allocation6], %s1431_s15, %s1431_s15, %s1432_s16  }
  0x42   : > { %s1218_s18 = scalar_lea.hbm %s1865_s3, 1024 }
  0x43   : > { %p1219_p6 = scmp.ne.s32.totalorder %s1865_s3, %s1218_s18  ;;  %p1225_p5 = scmp.lt.u32.totalorder %s1218_s18, %s1865_s3 }
  0x45   : > { %p1221_p10 = pnand %p1219_p6, %p1553_p13 }
  0x47   : > { %p1222_p3 = pneg %p1221_p10 }
  0x49   : > { %p1227_p7 = pnand %p1225_p5, %p1222_p3 }
  0x4b   : > { %1230 = shalt.err (!%p1227_p7)
}
  0x4c   : > { %s1231_s9 = scalar_lea.vmem %s259_s14, 1024  ;;  %p1239_p1 = scmp.lt.s32.totalorder %s259_s14, %s259_s14 }
  0x4d   : > { %p1232_p9 = scmp.ne.s32.totalorder %s259_s14, %s1231_s9  ;;  %p1240_p2 = scmp.lt.s32.totalorder %s1231_s9, %s1231_s9 }
  0x4f   : > { %p1234_p12 = pnand %p1232_p9, %p1553_p13  ;;  %p1241_p4 = por %p1240_p2, %p1239_p1 }
  0x51   : > { %p1235_p0 = pneg %p1234_p12 }
  0x53   : > { %p1242_p8 = pnand %p1241_p4, %p1235_p0 }
  0x55   : > { %1245 = shalt.err (!%p1242_p8)
}
  0x56   : > { %1060 = dma.hbm_to_vmem [thread:$0]  (!%p1537_p11), %s1865_s3, 1024, %s259_s14, [#allocation9], %s1431_s15, %s1431_s15, %s1432_s16  }
  0x57   : > { %s49_s20 = sadd.s32 1, %s1414_s23  ;;  %s40_s10 = sadd.s32 1, %s1422_s25 }
  0x58   : > { %p56_p4 = scmp.ne.s32.totalorder %s1414_s23, %s1410_s22  ;;  %p42_p8 = scmp.ge.s32.totalorder %s40_s10, 2 }
  0x59   : > { %p57_p13 = scmp.eq.s32.totalorder %s1426_s26, 0  ;;  %p1882_p6 = scmp.eq.s32.totalorder %s1505_s27, 1 }
  0x5a   : > { %p1078_p3 = scmp.lt.s32.totalorder %s1426_s26, 2  ;;  %s1902_s10 = smov (%p42_p8, %s40_s10), 0 }
  0x5b   : > { %p1632_p10 = por %p1882_p6, %p56_p4  ;;  %p58_p5 = por %p57_p13, %p56_p4 }
  0x5c   : > { %s272_s30 = sand.u32 1, %s1414_s23   ;;  %s44_s17 = ssub.s32 %s1422_s25, %s1902_s10 }
  0x5d   : > { %p47_p7 = scmp.eq.s32.totalorder %s44_s17, 0  ;;  %s902_s14 = sshll.u32 %s272_s30, 2 }
  0x5e   : > { %s903_s15 = sshll.u32 %s1422_s25, 6  ;;  %s276_s11 = scalar_lea.vmem [#allocation2], %s902_s14 }
  0x5f   : > { %s1644_s16 = scalar_select %p47_p7, %s1414_s23, %s49_s20  }
  0x60   : > { %s1649_s8 = scalar_lea.hbm %s1862_s0, %s903_s15  ;;  %s284_s13 = sshll.u32 %s276_s11, 4  ;;  %s1651_s13 = int_to_ptr.vmem [resolvable:$true] %s284_s13 }
  0x61   : > { %p1655_p11 = pnand %p1078_p3, %p58_p5  ;;  %s273_s12 = scalar_lea.sflag [#allocation3], %s272_s30 }
  0x62   : > { %s1246_s21 = scalar_lea.hbm %s1649_s8, 64  ;;  %s1251_s14 = scalar_lea.hbm %s1862_s0, 128 }
  0x63   : > { %p1247_p9 = scmp.ne.s32.totalorder %s1649_s8, %s1246_s21  ;;  %p1248_p12 = pneg %p1655_p11 }
  0x64   : > { %p1252_p2 = scmp.lt.u32.totalorder %s1649_s8, %s1862_s0  ;;  %p1253_p4 = scmp.lt.u32.totalorder %s1251_s14, %s1246_s21 }
  0x65   : > { %p1249_p0 = pnand %p1248_p12, %p1247_p9  ;;  %p1255_p13 = scmp.lt.u32.totalorder %s1246_s21, %s1649_s8 }
  0x66   : > { %p1254_p8 = por %p1253_p4, %p1252_p2 }
  0x67   : > { %p1250_p1 = pneg %p1249_p0 }
  0x68   : > { %p1256_p6 = por %p1255_p13, %p1254_p8 }
  0x6a   : > { %p1257_p3 = pnand %p1256_p6, %p1250_p1 }
  0x6c   : > { %1260 = shalt.err (!%p1257_p3)
}
  0x6d   : > { %s1261_s30 = scalar_lea.vmem %s1651_s13, 64  ;;  %s1433_s19 = smov [#allocation2]  }
  0x6e   : > { %p1262_p5 = scmp.ne.s32.totalorder %s1651_s13, %s1261_s30  ;;  %s1266_s11 = sshll.u32 %s1433_s19, 4  ;;  %s1267_s11 = int_to_ptr.vmem [resolvable:$false] %s1266_s11 }
  0x6f   : > { %s1268_s20 = scalar_lea.vmem %s1267_s11, 128  ;;  %p1269_p0 = scmp.lt.s32.totalorder %s1651_s13, %s1267_s11 }
  0x70   : > { %p1264_p7 = pnand %p1262_p5, %p1248_p12  ;;  %p1270_p2 = scmp.lt.s32.totalorder %s1268_s20, %s1261_s30 }
  0x72   : > { %p1265_p9 = pneg %p1264_p7  ;;  %p1271_p4 = por %p1270_p2, %p1269_p0 }
  0x74   : > { %p1272_p8 = pnand %p1271_p4, %p1265_p9 }
  0x76   : > { %1275 = shalt.err (!%p1272_p8)
}
  0x77   : > { %1064 = dma.hbm_to_vmem [thread:$0]  (!%p1655_p11), %s1649_s8, 64, %s1651_s13, %s273_s12  }
  0x78   : > { %p1885_p1 = scmp.ne.s32.totalorder %s1879_s7, 0 }
  0x79   : > { %s1687_s21 = sand.u32 (!%p1885_p1), 1, %s1410_s22   ;;  %p1886_p12 = scmp.ne.s32.totalorder (!%p1885_p1), %s1876_s29, 0 }
  0x7a   : > { %293 = sbr.rel (%p1885_p1) target bundleno = 447 (0x1bf), region = 36  ;;  %s1690_s17 = sshll.u32 (!%p1885_p1), %s1687_s21, 2 }
  0x7b   : > { %s296_s14 = scalar_lea.sflag (!%p1885_p1), [#allocation3], %s1687_s21  ;;  %s299_s15 = scalar_lea.vmem (!%p1885_p1), [#allocation2], %s1690_s17 }
  0x81   : > { %1385 = dma.done.wait (%p1886_p12), %s296_s14, 64  }
  0x82   : > { %1387 = vsyncadd (%p1886_p12), %s296_s14, 4294967232  ;;  %p1887_p11 = scmp.eq.s32.totalorder %s1505_s27, 0 }
  0x84   : > { %1389 = dma.done.wait (%p1887_p11), [#allocation6], 2048   ;;  %p1888_p13 = pmov %p1887_p11 }
  0x85   : > { %p1889_p6 = pmov %p1887_p11 }
  0x86   : > { %1391 = vsyncadd (%p1888_p13), [#allocation6], 4294965248 }
  0x87   : > { %1393 = dma.done.wait (%p1889_p6), [#allocation9], 1024   ;;  %p1890_p3 = pmov %p1889_p6 }
  0x88   : > { %v1434_v0 = vmov 0.0   ;;  %vm1435_vm0 = vmmov 0   ;;  %v1138_v1 = vld [vmem:[#allocation5] sm:$0xff]   ;;  %v1139_v2 = vld [vmem:[#allocation5 + $0x8] sm:$0xff]   ;;  %v1140_v3 = vld [vmem:[#allocation5 + $0x10] sm:$0xff]   ;;  %s1739_s29 = sshll.u32 %s1418_s24, 6 }
  0x89   : > { %1395 = vsyncadd (%p1890_p3), [#allocation9], 4294966272  ;;  %971 = vmatprep.subr.bf16.mxu0 %v1434_v0  ;;  %991 = vmatprep.subr.bf16.mxu1 %v1434_v0  ;;  %v1146_v4 = vld [vmem:[#allocation7] sm:$0xff]   ;;  %v1141_v5 = vld [vmem:[#allocation5 + $0x18] sm:$0xff]   ;;  %s335_s7 = scalar_lea.vmem [#allocation10], %s1690_s17  ;;  %s1746_s12 = scalar_lea.hbm %s1866_s4, %s1739_s29 }
  0x8a   : > { %987 = vmatprep.mubr.msk.bf16.mxu0 %vm1435_vm0, %v1434_v0  ;;  %1007 = vmatprep.mubr.msk.bf16.mxu1 %vm1435_vm0, %v1434_v0  ;;  %v1147_v6 = vld [vmem:[#allocation7 + $0x8] sm:$0xff]   ;;  %v1142_v7 = vld [vmem:[#allocation5 + $0x20] sm:$0xff]   ;;  %v1149_v8 = vld [vmem:[#allocation7 + $0x10] sm:$0xff]   ;;  %s695_s8 = sshll.u32 %s335_s7, 4  ;;  %s671_s24 = scalar_lea.sflag [#allocation4], %s1687_s21  ;;  %s1748_s8 = int_to_ptr.vmem [resolvable:$true] %s695_s8 }
  0x8b   : > { %972 = vmatpush3.bf16.msra.mxu0 %v1138_v1  ;;  %992 = vmatpush3.bf16.msra.mxu1 %v1146_v4  ;;  %v1143_v9 = vld [vmem:[#allocation5 + $0x28] sm:$0xff]   ;;  %v1151_v10 = vld [vmem:[#allocation7 + $0x18] sm:$0xff]   ;;  %v1144_v11 = vld [vmem:[#allocation5 + $0x30] sm:$0xff]   ;;  %s1276_s18 = scalar_lea.vmem %s1748_s8, 64  ;;  %s1436_s30 = smov [#allocation10]  }
  0x8c   : > { %973 = vmatprep.subr.bf16.mxu0 %v1434_v0  ;;  %993 = vmatprep.subr.bf16.mxu1 %v1434_v0  ;;  %v1153_v12 = vld [vmem:[#allocation7 + $0x20] sm:$0xff]   ;;  %v1145_v13 = vld [vmem:[#allocation5 + $0x38] sm:$0xff]   ;;  %v1155_v14 = vld [vmem:[#allocation7 + $0x28] sm:$0xff]   ;;  %p1277_p5 = scmp.ne.s32.totalorder %s1748_s8, %s1276_s18  ;;  %s1280_s19 = sshll.u32 %s1436_s30, 4  ;;  %s1281_s19 = int_to_ptr.vmem [resolvable:$false] %s1280_s19 }
  0x8d   : > { %v351_v15 = vld [vmem:[%s299_s15] sm:$0xf]  ;;  %v1148_v16 = vld [vmem:[#allocation8] sm:$0xff]   ;;  %v1157_v17 = vld [vmem:[#allocation7 + $0x30] sm:$0xff]   ;;  %s1282_s11 = scalar_lea.vmem %s1281_s19, 128  ;;  %p1283_p0 = scmp.lt.s32.totalorder %s1748_s8, %s1281_s19 }
  0x8e   : > { %v1150_v18 = vld [vmem:[#allocation8 + $0x8] sm:$0xff]   ;;  %v1159_v19 = vld [vmem:[#allocation7 + $0x38] sm:$0xff]   ;;  %v1152_v20 = vld [vmem:[#allocation8 + $0x10] sm:$0xff]   ;;  %p1278_p7 = pnand %p1277_p5, %p1632_p10  ;;  %p1284_p2 = scmp.lt.s32.totalorder %s1282_s11, %s1276_s18 }
  0x8f   : > { %974 = vmatpush3.bf16.msra.mxu0 %v1139_v2  ;;  %994 = vmatpush3.bf16.msra.mxu1 %v1147_v6  ;;  %v1154_v21 = vld [vmem:[#allocation8 + $0x18] sm:$0xff]   ;;  %v1156_v22 = vld [vmem:[#allocation8 + $0x20] sm:$0xff]   ;;  %v1158_v23 = vld [vmem:[#allocation8 + $0x28] sm:$0xff]  }
  0x90   : > { %975 = vmatprep.subr.bf16.mxu0 %v1434_v0  ;;  %995 = vmatprep.subr.bf16.mxu1 %v1434_v0  ;;  %v1160_v24 = vld [vmem:[#allocation8 + $0x30] sm:$0xff]   ;;  %v1161_v25 = vld [vmem:[#allocation8 + $0x38] sm:$0xff]   ;;  %p1279_p9 = pneg %p1278_p7  ;;  %p1285_p4 = por %p1284_p2, %p1283_p0 }
  0x92   : > { %p1286_p8 = pnand %p1285_p4, %p1279_p9 }
  0x93   : > { %976 = vmatpush3.bf16.msra.mxu0 %v1140_v3  ;;  %996 = vmatpush3.bf16.msra.mxu1 %v1149_v8 }
  0x94   : > { %977 = vmatprep.subr.bf16.mxu0 %v1434_v0  ;;  %997 = vmatprep.subr.bf16.mxu1 %v1434_v0 }
  0x97   : > { %978 = vmatpush3.bf16.msra.mxu0 %v1141_v5  ;;  %998 = vmatpush3.bf16.msra.mxu1 %v1151_v10 }
  0x98   : > { %979 = vmatprep.subr.bf16.mxu0 %v1434_v0  ;;  %999 = vmatprep.subr.bf16.mxu1 %v1434_v0 }
  0x9b   : > { %980 = vmatpush3.bf16.msra.mxu0 %v1142_v7  ;;  %1000 = vmatpush3.bf16.msra.mxu1 %v1153_v12 }
  0x9c   : > { %981 = vmatprep.subr.bf16.mxu0 %v1434_v0  ;;  %1001 = vmatprep.subr.bf16.mxu1 %v1434_v0 }
  0x9f   : > { %982 = vmatpush3.bf16.msra.mxu0 %v1143_v9  ;;  %1002 = vmatpush3.bf16.msra.mxu1 %v1155_v14 }
  0xa0   : > { %983 = vmatprep.subr.bf16.mxu0 %v1434_v0  ;;  %1003 = vmatprep.subr.bf16.mxu1 %v1434_v0 }
  0xa3   : > { %984 = vmatpush3.bf16.msra.mxu0 %v1144_v11  ;;  %1004 = vmatpush3.bf16.msra.mxu1 %v1157_v17 }
  0xa4   : > { %985 = vmatprep.subr.bf16.mxu0 %v1434_v0  ;;  %1005 = vmatprep.subr.bf16.mxu1 %v1434_v0 }
  0xa7   : > { %986 = vmatpush3.bf16.msra.mxu0 %v1145_v13  ;;  %1006 = vmatpush3.bf16.msra.mxu1 %v1159_v19 }
  0xa8   : > { %1011 = vmatprep.subr.bf16.mxu0 %v1434_v0 }
  0xaa   : > { %988 = vmatmul.mubr.bf16.vlgmr.msra.gmra.mrb[0].mxu0 %v351_v15  ;;  %1008 = vmatmul.mubr.bf16.vlgmr.msra.gmra.mrb[0].mxu1 %v351_v15 }
  0xab   : > { %1012 = vmatpush3.bf16.msra.mxu0 %v1148_v16  ;;  %1027 = vmatprep.mubr.msk.bf16.mxu0 %vm1435_vm0, %v1434_v0 }
  0xac   : > { %1013 = vmatprep.subr.bf16.mxu0 %v1434_v0 }
  0xaf   : > { %1014 = vmatpush3.bf16.msra.mxu0 %v1150_v18 }
  0xb0   : > { %1015 = vmatprep.subr.bf16.mxu0 %v1434_v0 }
  0xb3   : > { %1016 = vmatpush3.bf16.msra.mxu0 %v1152_v20 }
  0xb4   : > { %1017 = vmatprep.subr.bf16.mxu0 %v1434_v0 }
  0xb7   : > { %1018 = vmatpush3.bf16.msra.mxu0 %v1154_v21 }
  0xb8   : > { %1019 = vmatprep.subr.bf16.mxu0 %v1434_v0 }
  0xbb   : > { %1020 = vmatpush3.bf16.msra.mxu0 %v1156_v22 }
  0xbc   : > { %1021 = vmatprep.subr.bf16.mxu0 %v1434_v0 }
  0xbf   : > { %1022 = vmatpush3.bf16.msra.mxu0 %v1158_v23 }
  0xc0   : > { %1023 = vmatprep.subr.bf16.mxu0 %v1434_v0 }
  0xc3   : > { %1024 = vmatpush3.bf16.msra.mxu0 %v1160_v24 }
  0xc4   : > { %1025 = vmatprep.subr.bf16.mxu0 %v1434_v0 }
  0xc7   : > { %1026 = vmatpush3.bf16.msra.mxu0 %v1161_v25 }
  0xca   : > { %1028 = vmatmul.mubr.bf16.vlgmr.msra.gmra.mrb[4].mxu0 %v351_v15 }
 0x17d   : > { %v450_v26 = vpop.f32.mrb[0].mxu0 }
 0x17e   : > { %v456_v27 = vpack.c.bf16 %v450_v26, %v450_v26  ;;  %v989_v28 = vpop.f32.mrb[1].mxu0 }
 0x17f   : > { %v453_v29 = vpop.f32.mrb[2].mxu0 }
 0x180   : > { %457 = vst [vmem:[%s335_s7] sm:$0xf] %v456_v27  ;;  %v990_v30 = vpop.f32.mrb[3].mxu0 }
 0x181   : > { %1289 = shalt.err (!%p1286_p8)
}
 0x182   : > { %s1290_s20 = scalar_lea.hbm %s1746_s12, 64  ;;  %s1294_s15 = scalar_lea.hbm %s1866_s4, 128 }
 0x183   : > { %p1291_p1 = scmp.ne.s32.totalorder %s1746_s12, %s1290_s20  ;;  %p1295_p13 = scmp.lt.u32.totalorder %s1746_s12, %s1866_s4 }
 0x184   : > { %p1296_p6 = scmp.lt.u32.totalorder %s1294_s15, %s1290_s20  ;;  %p1298_p5 = scmp.lt.u32.totalorder %s1290_s20, %s1746_s12 }
 0x185   : > { %p1292_p12 = pnand %p1291_p1, %p1632_p10 }
 0x186   : > { %p1297_p3 = por %p1296_p6, %p1295_p13 }
 0x187   : > { %p1293_p11 = pneg %p1292_p12 }
 0x188   : > { %p1299_p7 = por %p1298_p5, %p1297_p3 }
 0x18a   : > { %p1300_p9 = pnand %p1299_p7, %p1293_p11 }
 0x18c   : > { %1303 = shalt.err (!%p1300_p9)
}
 0x18d   : > { %1045 = dma.vmem_to_hbm [thread:$0]  (%p1632_p10), %s1748_s8, 64, %s1746_s12, %s671_s24   ;;  %v556_v31 = vpop.f32.mrb[0].mxu1 }
 0x18e   : > { %s675_s9 = sand.u32 1, %s1505_s27   ;;  %s342_s18 = scalar_lea.vmem [#allocation11], %s1690_s17  ;;  %v562_v32 = vpack.c.bf16 %v556_v31, %v556_v31  ;;  %v1009_v33 = vpop.f32.mrb[1].mxu1 }
 0x18f   : > { %s709_s30 = sshll.u32 %s342_s18, 4  ;;  %s1778_s20 = scalar_lea.hbm %s1867_s5, %s1739_s29  ;;  %v559_v34 = vpop.f32.mrb[2].mxu1  ;;  %s1780_s30 = int_to_ptr.vmem [resolvable:$true] %s709_s30 }
 0x190   : > { %563 = vst [vmem:[%s342_s18] sm:$0xf] %v562_v32  ;;  %v1010_v35 = vpop.f32.mrb[3].mxu1  ;;  %s1782_s8 = scalar_lea.sflag [#allocation12], %s675_s9  ;;  %s1304_s27 = scalar_lea.vmem %s1780_s30, 64 }
 0x191   : > { %p1305_p0 = scmp.ne.s32.totalorder %s1780_s30, %s1304_s27  ;;  %s1437_s12 = smov [#allocation11]  }
 0x192   : > { %s1308_s24 = sshll.u32 %s1437_s12, 4  ;;  %s1309_s24 = int_to_ptr.vmem [resolvable:$false] %s1308_s24 }
 0x193   : > { %p1306_p2 = pnand %p1305_p0, %p1632_p10  ;;  %s1310_s21 = scalar_lea.vmem %s1309_s24, 128 }
 0x194   : > { %p1311_p8 = scmp.lt.s32.totalorder %s1780_s30, %s1309_s24  ;;  %p1312_p1 = scmp.lt.s32.totalorder %s1310_s21, %s1304_s27 }
 0x195   : > { %p1307_p4 = pneg %p1306_p2 }
 0x196   : > { %p1313_p12 = por %p1312_p1, %p1311_p8 }
 0x198   : > { %p1314_p11 = pnand %p1313_p12, %p1307_p4 }
 0x19a   : > { %1317 = shalt.err (!%p1314_p11)
}
 0x19b   : > { %s1318_s14 = scalar_lea.hbm %s1778_s20, 64  ;;  %s1322_s13 = scalar_lea.hbm %s1867_s5, 128 }
 0x19c   : > { %p1319_p13 = scmp.ne.s32.totalorder %s1778_s20, %s1318_s14  ;;  %p1323_p5 = scmp.lt.u32.totalorder %s1778_s20, %s1867_s5 }
 0x19d   : > { %p1324_p7 = scmp.lt.u32.totalorder %s1322_s13, %s1318_s14  ;;  %p1326_p0 = scmp.lt.u32.totalorder %s1318_s14, %s1778_s20 }
 0x19e   : > { %p1320_p6 = pnand %p1319_p13, %p1632_p10 }
 0x19f   : > { %p1325_p9 = por %p1324_p7, %p1323_p5 }
 0x1a0   : > { %p1321_p3 = pneg %p1320_p6 }
 0x1a1   : > { %p1327_p2 = por %p1326_p0, %p1325_p9 }
 0x1a3   : > { %p1328_p4 = pnand %p1327_p2, %p1321_p3 }
 0x1a5   : > { %1331 = shalt.err (!%p1328_p4)
}
 0x1a6   : > { %1046 = dma.vmem_to_hbm [thread:$0]  (%p1632_p10), %s1780_s30, 64, %s1778_s20, %s1782_s8   ;;  %v662_v36 = vpop.f32.mrb[4].mxu0 }
 0x1a7   : > { %s349_s19 = scalar_lea.vmem [#allocation13], %s1690_s17  ;;  %v668_v37 = vpack.c.bf16 %v662_v36, %v662_v36  ;;  %v1029_v38 = vpop.f32.mrb[5].mxu0  ;;  %s1811_s24 = scalar_lea.hbm %s1868_s6, %s1739_s29 }
 0x1a8   : > { %s723_s11 = sshll.u32 %s349_s19, 4  ;;  %v665_v39 = vpop.f32.mrb[6].mxu0  ;;  %s1438_s17 = smov [#allocation13]   ;;  %s1813_s11 = int_to_ptr.vmem [resolvable:$true] %s723_s11 }
 0x1a9   : > { %669 = vst [vmem:[%s349_s19] sm:$0xf] %v668_v37  ;;  %v1030_v40 = vpop.f32.mrb[7].mxu0  ;;  %s1332_s21 = scalar_lea.vmem %s1813_s11, 64  ;;  %s1336_s30 = sshll.u32 %s1438_s17, 4  ;;  %s1337_s30 = int_to_ptr.vmem [resolvable:$false] %s1336_s30 }
 0x1aa   : > { %p1333_p8 = scmp.ne.s32.totalorder %s1813_s11, %s1332_s21  ;;  %s1338_s20 = scalar_lea.vmem %s1337_s30, 128 }
 0x1ab   : > { %p1339_p11 = scmp.lt.s32.totalorder %s1813_s11, %s1337_s30  ;;  %p1340_p13 = scmp.lt.s32.totalorder %s1338_s20, %s1332_s21 }
 0x1ac   : > { %p1334_p1 = pnand %p1333_p8, %p1632_p10 }
 0x1ad   : > { %p1341_p6 = por %p1340_p13, %p1339_p11 }
 0x1ae   : > { %p1335_p12 = pneg %p1334_p1 }
 0x1b0   : > { %p1342_p3 = pnand %p1341_p6, %p1335_p12 }
 0x1b2   : > { %1345 = shalt.err (!%p1342_p3)
}
 0x1b3   : > { %s1346_s29 = scalar_lea.hbm %s1811_s24, 64  ;;  %s1350_s7 = scalar_lea.hbm %s1868_s6, 128 }
 0x1b4   : > { %p1347_p5 = scmp.ne.s32.totalorder %s1811_s24, %s1346_s29  ;;  %p1351_p0 = scmp.lt.u32.totalorder %s1811_s24, %s1868_s6 }
 0x1b5   : > { %p1352_p2 = scmp.lt.u32.totalorder %s1350_s7, %s1346_s29  ;;  %p1354_p8 = scmp.lt.u32.totalorder %s1346_s29, %s1811_s24 }
 0x1b6   : > { %p1348_p7 = pnand %p1347_p5, %p1632_p10 }
 0x1b7   : > { %p1353_p4 = por %p1352_p2, %p1351_p0 }
 0x1b8   : > { %p1349_p9 = pneg %p1348_p7 }
 0x1b9   : > { %p1355_p1 = por %p1354_p8, %p1353_p4 }
 0x1bb   : > { %p1356_p12 = pnand %p1355_p1, %p1349_p9 }
 0x1bd   : > { %1359 = shalt.err (!%p1356_p12)
}
 0x1be   : > { %1047 = dma.vmem_to_hbm [thread:$0]  (%p1632_p10), %s1813_s11, 64, %s1811_s24, %s1782_s8  }
 0x1bf PF: > { %s1891_s18 = sld [smem:[#allocation19_spill]]  ;;  %s1892_s19 = sld [smem:[#allocation20_spill]] }
 0x1c0   : > { %p1894_p13 = scmp.ge.s32.totalorder %s1426_s26, 2 }
 0x1c5   : > { %s735_s27 = sand.u32 1, %s1891_s18   ;;  %p1893_p11 = scmp.ne.s32.totalorder %s1892_s19, 0 }
 0x1c6   : > { %s736_s12 = scalar_lea.sflag [#allocation4], %s735_s27 }
 0x1c7   : > { %p1066_p6 = pnand %p1894_p13, %p1893_p11 }
 0x1c9   : > { %1397 = dma.done.wait (!%p1066_p6), %s736_s12, 64  }
 0x1ca   : > { %1399 = vsyncadd (!%p1066_p6), %s736_s12, 4294967232  ;;  %s1895_s21 = sadd.s32 4294967294, %s1426_s26  }
 0x1cb   : > { %s744_s17 = sand.u32 1, %s1895_s21  }
 0x1cc   : > { %s745_s30 = scalar_lea.sflag [#allocation12], %s744_s17 }
 0x1cd   : > { %1401 = dma.done.wait (!%p1066_p6), %s745_s30, 128  }
 0x1ce   : > { %1403 = vsyncadd (!%p1066_p6), %s745_s30, 4294967168  ;;  %s28_s26 = sadd.s32 1, %s1426_s26   ;;  %s1896_s21 = smov %s1410_s22 }
 0x1cf   : > { %p25_p10 = scmp.ge.s32.totalorder %s28_s26, 4   ;;  %s1897_s22 = smov %s1414_s23 }
 0x1d0   : > { %s1898_s23 = smov %s1644_s16  ;;  %s1899_s24 = smov %s1422_s25 }
 0x1d1   : > { %s1900_s25 = smov %s1902_s10  ;;  %27 = sbr.rel (!%p25_p10) target bundleno = 10 (0xa), region = 125 }
 0x1d8   :  { %759 = vsyncpa [#allocation3], 1 }
 0x1d9   :  { %761 = vsyncpa [#allocation3 + $0x1], 1 }
 0x1da   :  { %762 = vsyncpa [#allocation6], 1 }
 0x1db   :  { %763 = vsyncpa [#allocation9], 1 }
 0x1dc   :  { %764 = vsyncpa [#allocation4], 1 }
 0x1dd   :  { %766 = vsyncpa [#allocation4 + $0x1], 1 }
 0x1de   :  { %767 = vsyncpa [#allocation12], 1 }
 0x1df   :  { %769 = vsyncpa [#allocation12 + $0x1], 1 }

</bundles_post_ra>
